<compile_context>
chip_gen: v6e
topology: v6e:2x2x1
jax: 0.10.0
libtpu: 0.0.40
codegen_flags: <defaults>
</compile_context>

<pallas_src>
import jax
import jax.numpy as jnp
from jax.experimental import pallas as pl
from jax.experimental.pallas import tpu as pltpu


_LANE = 128
_MIB = 1024 * 1024


def _round_up(x, m):
    return (x + m - 1) // m * m


# ---------------------------------------------------------------------------
# Kernel: fused 3-layer MLP on one batch tile (weights VMEM-resident).
# ---------------------------------------------------------------------------
def mlp_kernel(x_ref, w1_ref, b1_ref, w2_ref, b2_ref, w3_ref, b3_ref, o_ref):
    # Layer 1: (bb, D_in) @ (D_in, H1) -> f32 accumulation, f32 bias + ReLU.
    h = jnp.dot(x_ref[...], w1_ref[...], preferred_element_type=jnp.float32)
    h = jnp.maximum(h + b1_ref[...], 0.0)
    # Layer 2: (bb, H1) @ (H1, H2)
    h = jnp.dot(h.astype(w2_ref.dtype), w2_ref[...],
                preferred_element_type=jnp.float32)
    h = jnp.maximum(h + b2_ref[...], 0.0)
    # Layer 3: (bb, H2) @ (H2, D_out)
    h = jnp.dot(h.astype(w3_ref.dtype), w3_ref[...],
                preferred_element_type=jnp.float32)
    o_ref[...] = jnp.maximum(h + b3_ref[...], 0.0).astype(o_ref.dtype)


# ---------------------------------------------------------------------------
# Parameter preparation (hoisted out of the per-call path).
# ---------------------------------------------------------------------------
def prepare_params(w1, b1, w2, b2, w3, b3, *, compute_dtype=jnp.float32):
    """Pad feature dims to multiples of 128 and cast the weights ONCE.

    Weights are (in, out); biases are (out,) or (1, out).  Doing this at init
    (rather than per forward call) avoids an extra HBM write+read of every
    weight on every call.  Zero-padded rows/cols stay exactly zero through
    matmul + zero bias + ReLU, so they never contaminate real outputs.
    """
    cdt = jnp.dtype(compute_dtype)
    D_in, H1 = w1.shape
    H2 = w2.shape[1]
    D_out = w3.shape[1]
    D_in_p, H1_p, H2_p, D_out_p = (_round_up(d, _LANE)
                                   for d in (D_in, H1, H2, D_out))

    def pad_w(w, r, c):
        return jnp.zeros((r, c), cdt).at[:w.shape[0], :w.shape[1]].set(
            w.astype(cdt))

    def pad_b(b, c):
        b = b.reshape(1, -1).astype(jnp.float32)
        return jnp.zeros((1, c), jnp.float32).at[:, :b.shape[1]].set(b)

    return dict(
        w1=pad_w(w1, D_in_p, H1_p), b1=pad_b(b1, H1_p),
        w2=pad_w(w2, H1_p, H2_p), b2=pad_b(b2, H2_p),
        w3=pad_w(w3, H2_p, D_out_p), b3=pad_b(b3, D_out_p),
        dims=(D_in, H1, H2, D_out),
        padded=(D_in_p, H1_p, H2_p, D_out_p),
        compute_dtype=cdt,
    )


# ---------------------------------------------------------------------------
# Tiling / VMEM budgeting helpers.
# ---------------------------------------------------------------------------
def _pick_batch_tile(B, block_batch, sublane, min_grid_steps):
    bb = max(sublane, min(block_batch, _round_up(B, sublane)))
    bb = _round_up(bb, sublane)
    n_steps = -(-B // bb)
    # >= 2 grid steps lets ("parallel",) shard the batch over v7x's two TCs.
    if n_steps < min_grid_steps and B > sublane:
        n_steps = min(min_grid_steps, -(-B // sublane))
    # Smallest sublane-multiple tile that still covers B in n_steps steps:
    # minimizes tail padding (B=300, block=256 -> 2x152, not 2x256).
    bb = _round_up(-(-B // n_steps), sublane)
    B_p = _round_up(B, bb)
    return bb, B_p, B_p // bb


def _vmem_capacity_bytes():
    try:
        info = pltpu.get_tpu_info()
        cap = getattr(info, "vmem_capacity_bytes", None)
        if cap:
            return int(cap)
    except Exception:
        pass
    return 64 * _MIB  # conservative: v7x per-TensorCore VMEM


def _vmem_needed_bytes(bb, padded, cdt, out_dtype, single_buffer_weights):
    D_in_p, H1_p, H2_p, D_out_p = padded
    c = jnp.dtype(cdt).itemsize
    o = jnp.dtype(out_dtype).itemsize
    wf = 1 if single_buffer_weights else 2
    w = (D_in_p * H1_p + H1_p * H2_p + H2_p * D_out_p) * c * wf
    b = (H1_p + H2_p + D_out_p) * 4 * wf
    x = 2 * bb * D_in_p * c          # double-buffered input tile
    y = 2 * bb * D_out_p * o         # double-buffered output tile
    h = 2 * bb * (H1_p + H2_p) * 4   # f32 intermediates + temporaries
    return w + b + x + y + h


# ---------------------------------------------------------------------------
# Fused pallas_call.
# ---------------------------------------------------------------------------
def _fused_call(xp, params, bb, n_steps, out_dtype, single_buffer_weights,
                vmem_limit_bytes):
    D_in_p, H1_p, H2_p, D_out_p = params["padded"]
    B_p = xp.shape[0]
    cdt = params["compute_dtype"]

    # Grid-invariant operands: constant index_map keeps them VMEM-resident;
    # Buffered(1) drops the pointless second buffer.
    const_kw = ({"pipeline_mode": pl.Buffered(1)}
                if single_buffer_weights else {})

    grid_spec = pl.GridSpec(
        grid=(n_steps,),
        in_specs=[
            pl.BlockSpec((bb, D_in_p), lambda i: (i, 0)),
            pl.BlockSpec((D_in_p, H1_p), lambda i: (0, 0), **const_kw),
            pl.BlockSpec((1, H1_p), lambda i: (0, 0), **const_kw),
            pl.BlockSpec((H1_p, H2_p), lambda i: (0, 0), **const_kw),
            pl.BlockSpec((1, H2_p), lambda i: (0, 0), **const_kw),
            pl.BlockSpec((H2_p, D_out_p), lambda i: (0, 0), **const_kw),
            pl.BlockSpec((1, D_out_p), lambda i: (0, 0), **const_kw),
        ],
        out_specs=pl.BlockSpec((bb, D_out_p), lambda i: (i, 0)),
    )

    c = jnp.dtype(cdt).itemsize
    o = jnp.dtype(out_dtype).itemsize
    w_elems = D_in_p * H1_p + H1_p * H2_p + H2_p * D_out_p
    cost = pl.CostEstimate(
        flops=2 * B_p * w_elems,
        transcendentals=0,
        bytes_accessed=(B_p * D_in_p * c + w_elems * c
                        + (H1_p + H2_p + D_out_p) * 4 + B_p * D_out_p * o),
    )

    return pl.pallas_call(
        mlp_kernel,
        out_shape=jax.ShapeDtypeStruct((B_p, D_out_p), out_dtype),
        grid_spec=grid_spec,
        compiler_params=pltpu.CompilerParams(
            dimension_semantics=("parallel",),
            vmem_limit_bytes=int(vmem_limit_bytes),
        ),
        cost_estimate=cost,
    )(xp, params["w1"], params["b1"], params["w2"], params["b2"],
      params["w3"], params["b3"])


def mlp_forward(x, params, *, block_batch=512, out_dtype=None,
                vmem_limit_bytes=None, min_grid_steps=2):
    """Fused 3-layer MLP forward using parameters from `prepare_params`."""
    out_dtype = jnp.dtype(out_dtype if out_dtype is not None else x.dtype)
    cdt = params["compute_dtype"]
    D_in, _, _, D_out = params["dims"]
    D_in_p, _, _, D_out_p = params["padded"]
    B = x.shape[0]
    assert x.shape[1] == D_in

    sublane = 16 if jnp.dtype(cdt).itemsize == 2 else 8
    bb, B_p, n_steps = _pick_batch_tile(B, block_batch, sublane,
                                        min_grid_steps)

    cap = _vmem_capacity_bytes()
    headroom = 8 * _MIB
    if _vmem_needed_bytes(bb, params["padded"], cdt, out_dtype,
                          True) > cap - headroom:
        # Resident weights would blow VMEM: plain-XLA fallback.
        # TODO(synk): hidden-dim (K/N)-tiled Pallas path with f32 VMEM
        # accumulator for very large hidden sizes.
        xc = x.astype(cdt)
        if D_in_p != D_in:
            xc = jnp.pad(xc, ((0, 0), (0, D_in_p - D_in)))
        h = jnp.maximum(jnp.dot(xc, params["w1"],
                                preferred_element_type=jnp.float32)
                        + params["b1"], 0.0)
        h = jnp.maximum(jnp.dot(h.astype(cdt), params["w2"],
                                preferred_element_type=jnp.float32)
                        + params["b2"], 0.0)
        h = jnp.maximum(jnp.dot(h.astype(cdt), params["w3"],
                                preferred_element_type=jnp.float32)
                        + params["b3"], 0.0)
        return h[:, :D_out].astype(out_dtype)

    def _limit(single_buffer_weights):
        if vmem_limit_bytes is not None:
            return vmem_limit_bytes
        need = _vmem_needed_bytes(bb, params["padded"], cdt, out_dtype,
                                  single_buffer_weights)
        return min(cap - headroom, max(2 * need, 32 * _MIB))

    # Pad/cast x only when needed (fast path skips the extra HBM pass).
    if (B_p != B) or (D_in_p != D_in) or (x.dtype != cdt):
        xp = jnp.zeros((B_p, D_in_p), cdt).at[:B, :D_in].set(x.astype(cdt))
    else:
        xp = x

    try:
        out = _fused_call(xp, params, bb, n_steps, out_dtype,
                          single_buffer_weights=True,
                          vmem_limit_bytes=_limit(True))
    except Exception:
        # Fallback for jax versions without BlockSpec(pipeline_mode=...):
        # default double-buffered weights are still correct, just more VMEM.
        out = _fused_call(xp, params, bb, n_steps, out_dtype,
                          single_buffer_weights=False,
                          vmem_limit_bytes=_limit(False))

    if (B_p != B) or (D_out_p != D_out):
        out = out[:B, :D_out]
    return out


# ---------------------------------------------------------------------------
# Synthetic params + reference.
# ---------------------------------------------------------------------------
def init_params(key, input_dim, n_hidden, output_dim, dtype=jnp.float32):
    """Deterministic synthetic parameters (weights stored as (in, out))."""
    k1, k2, k3, k4, k5, k6 = jax.random.split(key, 6)
    s1 = 1.0 / jnp.sqrt(input_dim)
    s2 = 1.0 / jnp.sqrt(n_hidden)
    w1 = jax.random.uniform(k1, (input_dim, n_hidden), dtype, -s1, s1)
    b1 = jax.random.uniform(k2, (1, n_hidden), dtype, -s1, s1)
    w2 = jax.random.uniform(k3, (n_hidden, n_hidden), dtype, -s2, s2)
    b2 = jax.random.uniform(k4, (1, n_hidden), dtype, -s2, s2)
    w3 = jax.random.uniform(k5, (n_hidden, output_dim), dtype, -s2, s2)
    b3 = jax.random.uniform(k6, (1, output_dim), dtype, -s2, s2)
    return w1, b1, w2, b2, w3, b3


def _reference(x, w1, b1, w2, b2, w3, b3):
    h = jnp.maximum(x @ w1 + b1, 0.0)
    h = jnp.maximum(h @ w2 + b2, 0.0)
    return jnp.maximum(h @ w3 + b3, 0.0)


if __name__ == "__main__":
    # Small shapes consistent with NN(input_dim=32, output_dim=16, n_hidden=32)
    batch, input_dim, n_hidden, output_dim = 16, 32, 32, 16

    key = jax.random.PRNGKey(0)
    kx, kp = jax.random.split(key)
    x = jax.random.normal(kx, (batch, input_dim), dtype=jnp.float32)
    w1, b1, w2, b2, w3, b3 = init_params(kp, input_dim, n_hidden, output_dim)

    # f32 path (matches PyTorch numerics); weights padded once at init.
    params_f32 = prepare_params(w1, b1, w2, b2, w3, b3,
                                compute_dtype=jnp.float32)
    out = jax.block_until_ready(mlp_forward(x, params_f32))
    ref = _reference(x, w1, b1, w2, b2, w3, b3)
    assert out.shape == (batch, output_dim)
    assert jnp.allclose(out, ref, atol=1e-5, rtol=1e-5)

    # bf16 MXU-operand path with an awkward batch (tail handling, >=2 grid
    # steps, multi-step grid for v7x dual-TC sharding).
    params_bf16 = prepare_params(w1, b1, w2, b2, w3, b3,
                                 compute_dtype=jnp.bfloat16)
    xb = jax.random.normal(jax.random.PRNGKey(1), (300, input_dim),
                           jnp.float32)
    out_b = jax.block_until_ready(mlp_forward(xb, params_bf16,
                                              block_batch=128))
    ref_b = _reference(xb, w1, b1, w2, b2, w3, b3)
    assert out_b.shape == (300, output_dim)
    assert jnp.all(jnp.isfinite(out_b))
    assert jnp.allclose(out_b, ref_b, atol=5e-2, rtol=5e-2)

    print("KERNEL_OK")
</pallas_src>

<mosaic_0001>
module attributes {stable_mosaic.version = 11 : i64} {
  func.func @mlp_kernel(%arg0: i32, %arg1: memref<8x128xf32, #tpu.memory_space<vmem>>, %arg2: memref<128x128xf32, #tpu.memory_space<vmem>>, %arg3: memref<1x128xf32, #tpu.memory_space<vmem>>, %arg4: memref<128x128xf32, #tpu.memory_space<vmem>>, %arg5: memref<1x128xf32, #tpu.memory_space<vmem>>, %arg6: memref<128x128xf32, #tpu.memory_space<vmem>>, %arg7: memref<1x128xf32, #tpu.memory_space<vmem>>, %arg8: memref<8x128xf32, #tpu.memory_space<vmem>>) attributes {dimension_semantics = [#tpu.dimension_semantics<parallel>], iteration_bounds = array<i64: 2>, scalar_prefetch = 0 : i64, scratch_operands = 0 : i64, tpu.core_type = #tpu.core_type<tc>, window_params = [{transform_indices = @transform_0, window_bounds = array<i64: 8, 128>}, {pipeline_mode = #tpu.pipeline_mode<synchronous>, transform_indices = @transform_1, window_bounds = array<i64: 128, 128>}, {pipeline_mode = #tpu.pipeline_mode<synchronous>, transform_indices = @transform_2, window_bounds = array<i64: 1, 128>}, {pipeline_mode = #tpu.pipeline_mode<synchronous>, transform_indices = @transform_3, window_bounds = array<i64: 128, 128>}, {pipeline_mode = #tpu.pipeline_mode<synchronous>, transform_indices = @transform_4, window_bounds = array<i64: 1, 128>}, {pipeline_mode = #tpu.pipeline_mode<synchronous>, transform_indices = @transform_5, window_bounds = array<i64: 128, 128>}, {pipeline_mode = #tpu.pipeline_mode<synchronous>, transform_indices = @transform_6, window_bounds = array<i64: 1, 128>}, {transform_indices = @transform_7, window_bounds = array<i64: 8, 128>}]} {
    %c0 = arith.constant 0 : index
    %c0_0 = arith.constant 0 : index
    %0 = vector.load %arg1[%c0, %c0_0] : memref<8x128xf32, #tpu.memory_space<vmem>>, vector<8x128xf32>
    %c0_1 = arith.constant 0 : index
    %c0_2 = arith.constant 0 : index
    %1 = vector.load %arg2[%c0_1, %c0_2] : memref<128x128xf32, #tpu.memory_space<vmem>>, vector<128x128xf32>
    %cst = arith.constant dense<0.000000e+00> : vector<8x128xf32>
    %2 = tpu.matmul %0, %1, %cst {dimension_numbers = #tpu.dot_dimension_numbers<[1], [0], [0], [1], [0, 0, 1, 1], [], []>} : vector<8x128xf32>, vector<128x128xf32>, vector<8x128xf32> -> vector<8x128xf32>
    %c0_3 = arith.constant 0 : index
    %c0_4 = arith.constant 0 : index
    %3 = vector.load %arg3[%c0_3, %c0_4] : memref<1x128xf32, #tpu.memory_space<vmem>>, vector<1x128xf32>
    %4 = vector.broadcast %3 : vector<1x128xf32> to vector<8x128xf32>
    %5 = arith.addf %2, %4 : vector<8x128xf32>
    %cst_5 = arith.constant 0.000000e+00 : f32
    %6 = vector.broadcast %cst_5 : f32 to vector<8x128xf32>
    %7 = arith.maximumf %5, %6 : vector<8x128xf32>
    %c0_6 = arith.constant 0 : index
    %c0_7 = arith.constant 0 : index
    %8 = vector.load %arg4[%c0_6, %c0_7] : memref<128x128xf32, #tpu.memory_space<vmem>>, vector<128x128xf32>
    %cst_8 = arith.constant dense<0.000000e+00> : vector<8x128xf32>
    %9 = tpu.matmul %7, %8, %cst_8 {dimension_numbers = #tpu.dot_dimension_numbers<[1], [0], [0], [1], [0, 0, 1, 1], [], []>} : vector<8x128xf32>, vector<128x128xf32>, vector<8x128xf32> -> vector<8x128xf32>
    %c0_9 = arith.constant 0 : index
    %c0_10 = arith.constant 0 : index
    %10 = vector.load %arg5[%c0_9, %c0_10] : memref<1x128xf32, #tpu.memory_space<vmem>>, vector<1x128xf32>
    %11 = vector.broadcast %10 : vector<1x128xf32> to vector<8x128xf32>
    %12 = arith.addf %9, %11 : vector<8x128xf32>
    %cst_11 = arith.constant 0.000000e+00 : f32
    %13 = vector.broadcast %cst_11 : f32 to vector<8x128xf32>
    %14 = arith.maximumf %12, %13 : vector<8x128xf32>
    %c0_12 = arith.constant 0 : index
    %c0_13 = arith.constant 0 : index
    %15 = vector.load %arg6[%c0_12, %c0_13] : memref<128x128xf32, #tpu.memory_space<vmem>>, vector<128x128xf32>
    %cst_14 = arith.constant dense<0.000000e+00> : vector<8x128xf32>
    %16 = tpu.matmul %14, %15, %cst_14 {dimension_numbers = #tpu.dot_dimension_numbers<[1], [0], [0], [1], [0, 0, 1, 1], [], []>} : vector<8x128xf32>, vector<128x128xf32>, vector<8x128xf32> -> vector<8x128xf32>
    %c0_15 = arith.constant 0 : index
    %c0_16 = arith.constant 0 : index
    %17 = vector.load %arg7[%c0_15, %c0_16] : memref<1x128xf32, #tpu.memory_space<vmem>>, vector<1x128xf32>
    %18 = vector.broadcast %17 : vector<1x128xf32> to vector<8x128xf32>
    %19 = arith.addf %16, %18 : vector<8x128xf32>
    %cst_17 = arith.constant 0.000000e+00 : f32
    %20 = vector.broadcast %cst_17 : f32 to vector<8x128xf32>
    %21 = arith.maximumf %19, %20 : vector<8x128xf32>
    %c0_18 = arith.constant 0 : index
    %c0_19 = arith.constant 0 : index
    %22 = vector.load %arg8[%c0_18, %c0_19] : memref<8x128xf32, #tpu.memory_space<vmem>>, vector<8x128xf32>
    tpu.vector_store %arg8[%c0_18, %c0_19], %21 {strides = array<i32>} : memref<8x128xf32, #tpu.memory_space<vmem>>, vector<8x128xf32>,
    return
  }
  func.func @transform_0(%arg0: i32) -> (i32, i32) {
    %c0_i32 = arith.constant 0 : i32
    %c0_i32_0 = arith.constant 0 : i32
    return %arg0, %c0_i32 : i32, i32
  }
  func.func @transform_1(%arg0: i32) -> (i32, i32) {
    %c0_i32 = arith.constant 0 : i32
    %c0_i32_0 = arith.constant 0 : i32
    %c0_i32_1 = arith.constant 0 : i32
    return %c0_i32, %c0_i32_0 : i32, i32
  }
  func.func @transform_2(%arg0: i32) -> (i32, i32) {
    %c0_i32 = arith.constant 0 : i32
    %c0_i32_0 = arith.constant 0 : i32
    %c0_i32_1 = arith.constant 0 : i32
    return %c0_i32, %c0_i32_0 : i32, i32
  }
  func.func @transform_3(%arg0: i32) -> (i32, i32) {
    %c0_i32 = arith.constant 0 : i32
    %c0_i32_0 = arith.constant 0 : i32
    %c0_i32_1 = arith.constant 0 : i32
    return %c0_i32, %c0_i32_0 : i32, i32
  }
  func.func @transform_4(%arg0: i32) -> (i32, i32) {
    %c0_i32 = arith.constant 0 : i32
    %c0_i32_0 = arith.constant 0 : i32
    %c0_i32_1 = arith.constant 0 : i32
    return %c0_i32, %c0_i32_0 : i32, i32
  }
  func.func @transform_5(%arg0: i32) -> (i32, i32) {
    %c0_i32 = arith.constant 0 : i32
    %c0_i32_0 = arith.constant 0 : i32
    %c0_i32_1 = arith.constant 0 : i32
    return %c0_i32, %c0_i32_0 : i32, i32
  }
  func.func @transform_6(%arg0: i32) -> (i32, i32) {
    %c0_i32 = arith.constant 0 : i32
    %c0_i32_0 = arith.constant 0 : i32
    %c0_i32_1 = arith.constant 0 : i32
    return %c0_i32, %c0_i32_0 : i32, i32
  }
  func.func @transform_7(%arg0: i32) -> (i32, i32) {
    %c0_i32 = arith.constant 0 : i32
    %c0_i32_0 = arith.constant 0 : i32
    return %arg0, %c0_i32 : i32, i32
  }
}

module attributes {stable_mosaic.version = 11 : i64} {
  func.func @mlp_kernel(%arg0: i32, %arg1: memref<8x128xf32, #tpu.memory_space<vmem>>, %arg2: memref<128x128xf32, #tpu.memory_space<vmem>>, %arg3: memref<1x128xf32, #tpu.memory_space<vmem>>, %arg4: memref<128x128xf32, #tpu.memory_space<vmem>>, %arg5: memref<1x128xf32, #tpu.memory_space<vmem>>, %arg6: memref<128x128xf32, #tpu.memory_space<vmem>>, %arg7: memref<1x128xf32, #tpu.memory_space<vmem>>, %arg8: memref<8x128xf32, #tpu.memory_space<vmem>>) attributes {dimension_semantics = [#tpu.dimension_semantics<parallel>], iteration_bounds = array<i64: 2>, scalar_prefetch = 0 : i64, scratch_operands = 0 : i64, tpu.core_type = #tpu.core_type<tc>, window_params = [{transform_indices = @transform_0, window_bounds = array<i64: 8, 128>}, {pipeline_mode = #tpu.pipeline_mode<synchronous>, transform_indices = @transform_1, window_bounds = array<i64: 128, 128>}, {pipeline_mode = #tpu.pipeline_mode<synchronous>, transform_indices = @transform_2, window_bounds = array<i64: 1, 128>}, {pipeline_mode = #tpu.pipeline_mode<synchronous>, transform_indices = @transform_3, window_bounds = array<i64: 128, 128>}, {pipeline_mode = #tpu.pipeline_mode<synchronous>, transform_indices = @transform_4, window_bounds = array<i64: 1, 128>}, {pipeline_mode = #tpu.pipeline_mode<synchronous>, transform_indices = @transform_5, window_bounds = array<i64: 128, 128>}, {pipeline_mode = #tpu.pipeline_mode<synchronous>, transform_indices = @transform_6, window_bounds = array<i64: 1, 128>}, {transform_indices = @transform_7, window_bounds = array<i64: 8, 128>}]} {
    %c0 = arith.constant 0 : index
    %c0_0 = arith.constant 0 : index
    %0 = vector.load %arg1[%c0, %c0_0] : memref<8x128xf32, #tpu.memory_space<vmem>>, vector<8x128xf32>
    %c0_1 = arith.constant 0 : index
    %c0_2 = arith.constant 0 : index
    %1 = vector.load %arg2[%c0_1, %c0_2] : memref<128x128xf32, #tpu.memory_space<vmem>>, vector<128x128xf32>
    %cst = arith.constant dense<0.000000e+00> : vector<8x128xf32>
    %2 = tpu.matmul %0, %1, %cst {dimension_numbers = #tpu.dot_dimension_numbers<[1], [0], [0], [1], [0, 0, 1, 1], [], []>} : vector<8x128xf32>, vector<128x128xf32>, vector<8x128xf32> -> vector<8x128xf32>
    %c0_3 = arith.constant 0 : index
    %c0_4 = arith.constant 0 : index
    %3 = vector.load %arg3[%c0_3, %c0_4] : memref<1x128xf32, #tpu.memory_space<vmem>>, vector<1x128xf32>
    %4 = vector.broadcast %3 : vector<1x128xf32> to vector<8x128xf32>
    %5 = arith.addf %2, %4 : vector<8x128xf32>
    %cst_5 = arith.constant 0.000000e+00 : f32
    %6 = vector.broadcast %cst_5 : f32 to vector<8x128xf32>
    %7 = arith.maximumf %5, %6 : vector<8x128xf32>
    %c0_6 = arith.constant 0 : index
    %c0_7 = arith.constant 0 : index
    %8 = vector.load %arg4[%c0_6, %c0_7] : memref<128x128xf32, #tpu.memory_space<vmem>>, vector<128x128xf32>
    %cst_8 = arith.constant dense<0.000000e+00> : vector<8x128xf32>
    %9 = tpu.matmul %7, %8, %cst_8 {dimension_numbers = #tpu.dot_dimension_numbers<[1], [0], [0], [1], [0, 0, 1, 1], [], []>} : vector<8x128xf32>, vector<128x128xf32>, vector<8x128xf32> -> vector<8x128xf32>
    %c0_9 = arith.constant 0 : index
    %c0_10 = arith.constant 0 : index
    %10 = vector.load %arg5[%c0_9, %c0_10] : memref<1x128xf32, #tpu.memory_space<vmem>>, vector<1x128xf32>
    %11 = vector.broadcast %10 : vector<1x128xf32> to vector<8x128xf32>
    %12 = arith.addf %9, %11 : vector<8x128xf32>
    %cst_11 = arith.constant 0.000000e+00 : f32
    %13 = vector.broadcast %cst_11 : f32 to vector<8x128xf32>
    %14 = arith.maximumf %12, %13 : vector<8x128xf32>
    %c0_12 = arith.constant 0 : index
    %c0_13 = arith.constant 0 : index
    %15 = vector.load %arg6[%c0_12, %c0_13] : memref<128x128xf32, #tpu.memory_space<vmem>>, vector<128x128xf32>
    %cst_14 = arith.constant dense<0.000000e+00> : vector<8x128xf32>
    %16 = tpu.matmul %14, %15, %cst_14 {dimension_numbers = #tpu.dot_dimension_numbers<[1], [0], [0], [1], [0, 0, 1, 1], [], []>} : vector<8x128xf32>, vector<128x128xf32>, vector<8x128xf32> -> vector<8x128xf32>
    %c0_15 = arith.constant 0 : index
    %c0_16 = arith.constant 0 : index
    %17 = vector.load %arg7[%c0_15, %c0_16] : memref<1x128xf32, #tpu.memory_space<vmem>>, vector<1x128xf32>
    %18 = vector.broadcast %17 : vector<1x128xf32> to vector<8x128xf32>
    %19 = arith.addf %16, %18 : vector<8x128xf32>
    %cst_17 = arith.constant 0.000000e+00 : f32
    %20 = vector.broadcast %cst_17 : f32 to vector<8x128xf32>
    %21 = arith.maximumf %19, %20 : vector<8x128xf32>
    %c0_18 = arith.constant 0 : index
    %c0_19 = arith.constant 0 : index
    %22 = vector.load %arg8[%c0_18, %c0_19] : memref<8x128xf32, #tpu.memory_space<vmem>>, vector<8x128xf32>
    tpu.vector_store %arg8[%c0_18, %c0_19], %21 {strides = array<i32>} : memref<8x128xf32, #tpu.memory_space<vmem>>, vector<8x128xf32>,
    return
  }
  func.func @transform_0(%arg0: i32) -> (i32, i32) {
    %c0_i32 = arith.constant 0 : i32
    %c0_i32_0 = arith.constant 0 : i32
    return %arg0, %c0_i32 : i32, i32
  }
  func.func @transform_1(%arg0: i32) -> (i32, i32) {
    %c0_i32 = arith.constant 0 : i32
    %c0_i32_0 = arith.constant 0 : i32
    %c0_i32_1 = arith.constant 0 : i32
    return %c0_i32, %c0_i32_0 : i32, i32
  }
  func.func @transform_2(%arg0: i32) -> (i32, i32) {
    %c0_i32 = arith.constant 0 : i32
    %c0_i32_0 = arith.constant 0 : i32
    %c0_i32_1 = arith.constant 0 : i32
    return %c0_i32, %c0_i32_0 : i32, i32
  }
  func.func @transform_3(%arg0: i32) -> (i32, i32) {
    %c0_i32 = arith.constant 0 : i32
    %c0_i32_0 = arith.constant 0 : i32
    %c0_i32_1 = arith.constant 0 : i32
    return %c0_i32, %c0_i32_0 : i32, i32
  }
  func.func @transform_4(%arg0: i32) -> (i32, i32) {
    %c0_i32 = arith.constant 0 : i32
    %c0_i32_0 = arith.constant 0 : i32
    %c0_i32_1 = arith.constant 0 : i32
    return %c0_i32, %c0_i32_0 : i32, i32
  }
  func.func @transform_5(%arg0: i32) -> (i32, i32) {
    %c0_i32 = arith.constant 0 : i32
    %c0_i32_0 = arith.constant 0 : i32
    %c0_i32_1 = arith.constant 0 : i32
    return %c0_i32, %c0_i32_0 : i32, i32
  }
  func.func @transform_6(%arg0: i32) -> (i32, i32) {
    %c0_i32 = arith.constant 0 : i32
    %c0_i32_0 = arith.constant 0 : i32
    %c0_i32_1 = arith.constant 0 : i32
    return %c0_i32, %c0_i32_0 : i32, i32
  }
  func.func @transform_7(%arg0: i32) -> (i32, i32) {
    %c0_i32 = arith.constant 0 : i32
    %c0_i32_0 = arith.constant 0 : i32
    return %arg0, %c0_i32 : i32, i32
  }
}

</mosaic_0001>

<bundles_post_ra>
// kernel: tpu_custom_call.1
= control target key start
LH: loop header
LB: loop body
LE: loop exit
PB: predicated region body
PF: predicated region fallthrough
CT: control target
= control target key end

     0   :  { %s1469_s0 = inlined_call_operand.hbm [shape: f32[16,128], index: 0, kind: input, shape index: {}]   ;;  %s1470_s1 = inlined_call_operand.hbm [shape: f32[128,128], index: 1, kind: input, shape index: {}]   ;;  %s1471_s2 = inlined_call_operand.vmem [shape: f32[1,128], index: 2, kind: input, shape index: {}]   ;;  %s1472_s3 = inlined_call_operand.hbm [shape: f32[128,128], index: 3, kind: input, shape index: {}]   ;;  %s1473_s4 = inlined_call_operand.vmem [shape: f32[1,128], index: 4, kind: input, shape index: {}]   ;;  %s1474_s5 = inlined_call_operand.hbm [shape: f32[128,128], index: 5, kind: input, shape index: {}]   ;;  %s1475_s6 = inlined_call_operand.vmem [shape: f32[1,128], index: 6, kind: input, shape index: {}]   ;;  %s1476_s7 = inlined_call_operand.hbm [shape: f32[16,128], index: 7, kind: output, shape index: {}]  }
   0x1   :  { %1481 = sst [smem:[#allocation15_spill]] %s1470_s1 }
   0x2   :  { %1482 = sst [smem:[#allocation16_spill]] %s1472_s3 }
   0x3   :  { %12 = vsyncpa [#allocation3], 0 }
   0x4   :  { %14 = vsyncpa [#allocation3 + $0x1], 0 }
   0x5   :  { %15 = vsyncpa [#allocation6], 0 }
   0x6   :  { %16 = vsyncpa [#allocation9], 0 }
   0x7   :  { %17 = vsyncpa [#allocation4], 0 }
   0x8   :  { %19 = vsyncpa [#allocation4 + $0x1], 0  ;;  %s1222_s24 = smov 0   ;;  %s1224_s25 = smov 0  }
   0x9   :  { %s1226_s26 = smov 0   ;;  %s1228_s27 = smov 0  }
   0xa LB: > { %s1243_s28 = sadd.s32 4294967295, %s1171_s27   ;;  %s735_s29 = sadd.s32 4294967294, %s1171_s27   ;;  %s1171_s27 = sphi %s1228_s27, %s1504_s27   ;;  %s1167_s26 = sphi %s1226_s26, %s1503_s26   ;;  %s1163_s25 = sphi %s1224_s25, %s1502_s25   ;;  %s1159_s24 = sphi %s1222_s24, %s1501_s24  }
   0xb   : > { %p45_p0 = scmp.ne.s32.totalorder %s1163_s25, %s1159_s24  ;;  %p1477_p1 = scmp.eq.s32.totalorder %s1243_s28, 0 }
   0xc   : > { %p201_p3 = scmp.eq.s32.totalorder %s735_s29, 1  ;;  %p736_p5 = scmp.ge.s32.totalorder %s1171_s27, 1 }
   0xd   : > { %p1252_p4 = por %p1477_p1, %p45_p0  ;;  %p208_p7 = scmp.lt.s32.totalorder %s1171_s27, 3 }
   0xe   : > { %p1257_p6 = por %p201_p3, %p45_p0  ;;  %s1173_s10 = smov [#allocation5]  }
   0xf   : > { %s1483_s30 = scalar_select %p1252_p4, 1, 0 }
  0x10   : > { %s1484_s8 = scalar_select %p1257_p6, 1, 0 }
  0x11   : > { %p1262_p8 = pnand %p736_p5, %p208_p7  ;;  %s220_s11 = sshll.u32 %s1173_s10, 4  ;;  %s221_s11 = int_to_ptr.vmem [resolvable:$true] %s220_s11 }
  0x12   : > { %s1174_s13 = smov [#allocation7]   ;;  %s1175_s15 = smov [#allocation8]  }
  0x13   : > { %s1485_s9 = scalar_select %p1262_p8, 1, 0 }
  0x14   : > { %p928_p9 = pneg %p1262_p8  ;;  %s236_s14 = sshll.u32 %s1174_s13, 4  ;;  %s237_s14 = int_to_ptr.vmem [resolvable:$true] %s236_s14 }
  0x15   : > { %s252_s16 = sshll.u32 %s1175_s15, 4  ;;  %s1004_s17 = scalar_lea.vmem %s221_s11, 2048  ;;  %s253_s16 = int_to_ptr.vmem [resolvable:$true] %s252_s16 }
  0x16   : > { %p1271_p11 = pnand %p928_p9, %p1477_p1  ;;  %p1005_p13 = scmp.ne.s32.totalorder %s221_s11, %s1004_s17 }
  0x17   : > { %p1012_p5 = scmp.lt.s32.totalorder %s221_s11, %s221_s11  ;;  %p1013_p7 = scmp.lt.s32.totalorder %s1004_s17, %s1004_s17 }
  0x18   : > { %p995_p12 = pneg %p1271_p11 }
  0x19   : > { %p1014_p9 = por %p1013_p7, %p1012_p5 }
  0x1a   : > { %p1007_p0 = pnand %p1005_p13, %p995_p12 }
  0x1c   : > { %p1008_p3 = pneg %p1007_p0 }
  0x1e   : > { %p1015_p10 = pnand %p1014_p9, %p1008_p3 }
  0x20   : > { %1018 = shalt.err (!%p1015_p10)
}
  0x21   : > { %s1176_s18 = smov 128   ;;  %s1177_s19 = smov 8  }
  0x22   : > { %s1487_s1 = sld [smem:[#allocation15_spill]]  ;;  %s1030_s22 = scalar_lea.vmem %s237_s14, 2048 }
  0x23   : > { %p1031_p1 = scmp.ne.s32.totalorder %s237_s14, %s1030_s22  ;;  %p1038_p2 = scmp.lt.s32.totalorder %s237_s14, %s237_s14 }
  0x24   : > { %p1039_p6 = scmp.lt.s32.totalorder %s1030_s22, %s1030_s22 }
  0x25   : > { %p1033_p13 = pnand %p1031_p1, %p995_p12 }
  0x26   : > { %p1040_p5 = por %p1039_p6, %p1038_p2 }
  0x27   : > { %p1034_p0 = pneg %p1033_p13 }
  0x28   : > { %931 = dma.hbm_to_vmem [thread:$0]  (!%p1271_p11), %s1487_s1, 2048, %s221_s11, [#allocation6], %s1176_s18, %s1176_s18, %s1177_s19  }
  0x29   : > { %p1041_p3 = pnand %p1040_p5, %p1034_p0 }
  0x2b   : > { %1044 = shalt.err (!%p1041_p3)
}
  0x2c   : > { %s1488_s3 = sld [smem:[#allocation16_spill]]  ;;  %s1056_s10 = scalar_lea.vmem %s253_s16, 2048 }
  0x2d   : > { %p1057_p10 = scmp.ne.s32.totalorder %s253_s16, %s1056_s10  ;;  %p1064_p9 = scmp.lt.s32.totalorder %s253_s16, %s253_s16 }
  0x2e   : > { %p1065_p13 = scmp.lt.s32.totalorder %s1056_s10, %s1056_s10 }
  0x2f   : > { %p1059_p7 = pnand %p1057_p10, %p995_p12 }
  0x30   : > { %p1066_p4 = por %p1065_p13, %p1064_p9 }
  0x31   : > { %p1060_p1 = pneg %p1059_p7 }
  0x32   : > { %934 = dma.hbm_to_vmem [thread:$0]  (!%p1271_p11), %s1488_s3, 2048, %s237_s14, [#allocation6], %s1176_s18, %s1176_s18, %s1177_s19  }
  0x33   : > { %p1067_p2 = pnand %p1066_p4, %p1060_p1 }
  0x35   : > { %1070 = shalt.err (!%p1067_p2)
}
  0x36   : > { %937 = dma.hbm_to_vmem [thread:$0]  (!%p1271_p11), %s1474_s5, 2048, %s253_s16, [#allocation9], %s1176_s18, %s1176_s18, %s1177_s19  }
  0x37   : > { %s1302_s14 = sadd.s32 1, %s1171_s27   ;;  %s32_s12 = sadd.s32 1, %s1167_s26 }
  0x38   : > { %s29_s15 = ssub.s32 %s1171_s27, %s1302_s14  ;;  %p39_p6 = scmp.ne.s32.totalorder %s1167_s26, %s1163_s25 }
  0x39   : > { %p30_p4 = scmp.eq.s32.totalorder %s29_s15, 0  ;;  %p40_p12 = scmp.eq.s32.totalorder %s1171_s27, 0 }
  0x3a   : > { %p949_p0 = scmp.lt.s32.totalorder %s1171_s27, 2  ;;  %p1489_p3 = scmp.eq.s32.totalorder %s1243_s28, 1 }
  0x3b   : > { %s1312_s17 = scalar_select %p30_p4, %s1167_s26, %s32_s12  }
  0x3c   : > { %p41_p5 = por %p40_p12, %p39_p6  ;;  %p1316_p10 = por %p1489_p3, %p39_p6 }
  0x3d   : > { %s269_s21 = sand.u32 1, %s1167_s26   ;;  %s742_s22 = sshll.u32 %s1171_s27, 7 }
  0x3e   : > { %s1490_s20 = scalar_select %p1316_p10, 1, 0 }
  0x3f   : > { %s741_s16 = sshll.u32 %s269_s21, 3  ;;  %s1325_s23 = scalar_lea.hbm %s1469_s0, %s742_s22 }
  0x40   : > { %s273_s29 = scalar_lea.vmem [#allocation2], %s741_s16  ;;  %p1327_p11 = pnand %p949_p0, %p41_p5 }
  0x41   : > { %s280_s10 = sshll.u32 %s273_s29, 4  ;;  %s270_s13 = scalar_lea.sflag [#allocation3], %s269_s21  ;;  %s281_s10 = int_to_ptr.vmem [resolvable:$true] %s280_s10 }
  0x42   : > { %s1071_s15 = scalar_lea.hbm %s1325_s23, 128  ;;  %p1073_p1 = pneg %p1327_p11 }
  0x43   : > { %p1072_p7 = scmp.ne.s32.totalorder %s1325_s23, %s1071_s15  ;;  %s1076_s18 = scalar_lea.hbm %s1469_s0, 256 }
  0x44   : > { %p1077_p2 = scmp.lt.s32.totalorder %s1325_s23, %s1469_s0  ;;  %p1078_p4 = scmp.lt.s32.totalorder %s1076_s18, %s1071_s15 }
  0x45   : > { %p1074_p9 = pnand %p1073_p1, %p1072_p7 }
  0x46   : > { %p1079_p6 = por %p1078_p4, %p1077_p2 }
  0x47   : > { %p1075_p13 = pneg %p1074_p9 }
  0x49   : > { %p1080_p12 = pnand %p1079_p6, %p1075_p13 }
  0x4b   : > { %1083 = shalt.err (!%p1080_p12)
}
  0x4c   : > { %s1084_s29 = scalar_lea.vmem %s281_s10, 128  ;;  %s1178_s21 = smov [#allocation2]  }
  0x4d   : > { %p1085_p0 = scmp.ne.s32.totalorder %s281_s10, %s1084_s29  ;;  %s1089_s1 = sshll.u32 %s1178_s21, 4  ;;  %s1090_s1 = int_to_ptr.vmem [resolvable:$false] %s1089_s1 }
  0x4e   : > { %s1091_s3 = scalar_lea.vmem %s1090_s1, 256  ;;  %p1092_p7 = scmp.lt.s32.totalorder %s281_s10, %s1090_s1 }
  0x4f   : > { %p1087_p5 = pnand %p1085_p0, %p1073_p1  ;;  %p1093_p9 = scmp.lt.s32.totalorder %s1091_s3, %s1084_s29 }
  0x51   : > { %p1088_p3 = pneg %p1087_p5  ;;  %p1094_p10 = por %p1093_p9, %p1092_p7 }
  0x53   : > { %p1095_p8 = pnand %p1094_p10, %p1088_p3 }
  0x55   : > { %1098 = shalt.err (!%p1095_p8)
}
  0x56   : > { %941 = dma.hbm_to_vmem [thread:$0]  (!%p1327_p11), %s1325_s23, 128, %s281_s10, %s270_s13  }
  0x57   : > { %p1492_p13 = scmp.ne.s32.totalorder %s1485_s9, 0 }
  0x58   : > { %s1348_s15 = sand.u32 (!%p1492_p13), 1, %s1163_s25   ;;  %p1493_p8 = scmp.ne.s32.totalorder (!%p1492_p13), %s1483_s30, 0 }
  0x59   : > { %289 = sbr.rel (%p1492_p13) target bundleno = 739 (0x2e3), region = 48  ;;  %s744_s12 = sshll.u32 (!%p1492_p13), %s1348_s15, 3 }
  0x5a   : > { %s292_s1 = scalar_lea.sflag (!%p1492_p13), [#allocation3], %s1348_s15  ;;  %s1354_s3 = scalar_lea.vmem (!%p1492_p13), [#allocation2], %s744_s12 }
  0x5e   : > { %1142 = dma.done.wait (%p1493_p8), %s292_s1, 128  }
  0x5f   : > { %1144 = vsyncadd (%p1493_p8), %s292_s1, 4294967168  ;;  %p1494_p10 = scmp.eq.s32.totalorder %s1243_s28, 0 }
  0x61   : > { %1146 = dma.done.wait (%p1494_p10), [#allocation6], 4096   ;;  %p1495_p11 = pmov %p1494_p10 }
  0x62   : > { %p1496_p1 = pmov %p1494_p10 }
  0x63   : > { %1148 = vsyncadd (%p1495_p11), [#allocation6], 4294963200 }
  0x64   : > { %1150 = dma.done.wait (%p1496_p1), [#allocation9], 2048   ;;  %p1497_p2 = pmov %p1496_p1 }
  0x65   : > { %v1179_v0 = vmov 0.0   ;;  %vm1180_vm0 = vmmov 0   ;;  %v354_v1 = vld [vmem:[#allocation5 + $0x78] sm:$0xff]  ;;  %v353_v2 = vld [vmem:[#allocation5 + $0x70] sm:$0xff]  ;;  %v352_v3 = vld [vmem:[#allocation5 + $0x68] sm:$0xff]  ;;  %s753_s22 = sshll.u32 %s1243_s28, 7 }
  0x66   : > { %1152 = vsyncadd (%p1497_p2), [#allocation9], 4294965248  ;;  %807 = vmatprep.subr.mxu0 %v1179_v0  ;;  %839 = vmatprep.mubr.msk.f32.mxu0 %vm1180_vm0, %v1179_v0  ;;  %v351_v4 = vld [vmem:[#allocation5 + $0x60] sm:$0xff]  ;;  %v448_v5 = vld [vmem:[#allocation7 + $0x78] sm:$0xff]  ;;  %s337_s18 = scalar_lea.vmem [#allocation10], %s744_s12  ;;  %s634_s21 = scalar_lea.hbm %s1476_s7, %s753_s22 }
  0x67   : > { %842 = vmatprep.subr.mxu1 %v1179_v0  ;;  %874 = vmatprep.mubr.msk.f32.mxu1 %vm1180_vm0, %v1179_v0  ;;  %v350_v6 = vld [vmem:[#allocation5 + $0x58] sm:$0xff]  ;;  %v447_v7 = vld [vmem:[#allocation7 + $0x70] sm:$0xff]  ;;  %v446_v8 = vld [vmem:[#allocation7 + $0x68] sm:$0xff]  ;;  %s636_s19 = sshll.u32 %s337_s18, 4  ;;  %s623_s1 = scalar_lea.sflag [#allocation4], %s1348_s15  ;;  %s637_s19 = int_to_ptr.vmem [resolvable:$true] %s636_s19 }
  0x68   : > { %808 = vmatpush3.msra.mxu0 %v354_v1  ;;  %843 = vmatpush3.msra.mxu1 %v448_v5  ;;  %v349_v9 = vld [vmem:[#allocation5 + $0x50] sm:$0xff]  ;;  %v445_v10 = vld [vmem:[#allocation7 + $0x60] sm:$0xff]  ;;  %v348_v11 = vld [vmem:[#allocation5 + $0x48] sm:$0xff]  ;;  %p1498_p6 = scmp.ne.s32.totalorder %s1490_s20, 0  ;;  %s1181_s30 = smov [#allocation10]  }
  0x69   : > { %809 = vmatprep.subr.mxu0 %v1179_v0  ;;  %844 = vmatprep.subr.mxu1 %v1179_v0  ;;  %v444_v12 = vld [vmem:[#allocation7 + $0x58] sm:$0xff]  ;;  %v347_v13 = vld [vmem:[#allocation5 + $0x40] sm:$0xff]  ;;  %v443_v14 = vld [vmem:[#allocation7 + $0x50] sm:$0xff]  ;;  %s1103_s28 = sshll.u32 %s1181_s30, 4  ;;  %s1104_s28 = int_to_ptr.vmem [resolvable:$false] %s1103_s28 }
  0x6a   : > { %810 = vmatpush3.msra.mxu0 %v353_v2  ;;  %845 = vmatpush3.msra.mxu1 %v447_v7  ;;  %v346_v15 = vld [vmem:[#allocation5 + $0x38] sm:$0xff]  ;;  %v442_v16 = vld [vmem:[#allocation7 + $0x48] sm:$0xff]  ;;  %v345_v17 = vld [vmem:[#allocation5 + $0x30] sm:$0xff]  ;;  %s1105_s12 = scalar_lea.vmem %s1104_s28, 256  ;;  %p1106_p5 = scmp.lt.s32.totalorder %s637_s19, %s1104_s28 }
  0x6b   : > { %811 = vmatprep.subr.mxu0 %v1179_v0  ;;  %846 = vmatprep.subr.mxu1 %v1179_v0  ;;  %v441_v18 = vld [vmem:[#allocation7 + $0x40] sm:$0xff]  ;;  %v344_v19 = vld [vmem:[#allocation5 + $0x28] sm:$0xff]  ;;  %v440_v20 = vld [vmem:[#allocation7 + $0x38] sm:$0xff] }
  0x6c   : > { %812 = vmatpush3.msra.mxu0 %v352_v3  ;;  %847 = vmatpush3.msra.mxu1 %v446_v8  ;;  %v343_v21 = vld [vmem:[#allocation5 + $0x20] sm:$0xff]  ;;  %v439_v22 = vld [vmem:[#allocation7 + $0x30] sm:$0xff]  ;;  %v342_v23 = vld [vmem:[#allocation5 + $0x18] sm:$0xff] }
  0x6d   : > { %813 = vmatprep.subr.mxu0 %v1179_v0  ;;  %848 = vmatprep.subr.mxu1 %v1179_v0  ;;  %v438_v24 = vld [vmem:[#allocation7 + $0x28] sm:$0xff]  ;;  %v341_v25 = vld [vmem:[#allocation5 + $0x10] sm:$0xff]  ;;  %v437_v26 = vld [vmem:[#allocation7 + $0x20] sm:$0xff] }
  0x6e   : > { %814 = vmatpush3.msra.mxu0 %v351_v4  ;;  %849 = vmatpush3.msra.mxu1 %v445_v10  ;;  %v340_v27 = vld [vmem:[#allocation5 + $0x8] sm:$0xff]  ;;  %v436_v28 = vld [vmem:[#allocation7 + $0x18] sm:$0xff]  ;;  %v339_v29 = vld [vmem:[#allocation5] sm:$0xff] }
  0x6f   : > { %815 = vmatprep.subr.mxu0 %v1179_v0  ;;  %850 = vmatprep.subr.mxu1 %v1179_v0  ;;  %v338_v30 = vld [vmem:[%s1354_s3] sm:$0xff]  ;;  %v434_v32 = vld [vmem:[#allocation7 + $0x8] sm:$0xff]  ;;  %v433_v33 = vld [vmem:[#allocation7] sm:$0xff]  ;;  %s1099_s3 = scalar_lea.vmem %s637_s19, 128 }
  0x70   : > { %816 = vmatpush3.msra.mxu0 %v350_v6  ;;  %851 = vmatpush3.msra.mxu1 %v444_v12  ;;  %v435_v31 = vld [vmem:[#allocation7 + $0x10] sm:$0xff]  ;;  %v542_v34 = vld [vmem:[#allocation8 + $0x78] sm:$0xff]  ;;  %v540_v36 = vld [vmem:[#allocation8 + $0x68] sm:$0xff]  ;;  %p1100_p4 = scmp.ne.s32.totalorder %s637_s19, %s1099_s3  ;;  %p1107_p3 = scmp.lt.s32.totalorder %s1105_s12, %s1099_s3 }
  0x71   : > { %817 = vmatprep.subr.mxu0 %v1179_v0  ;;  %852 = vmatprep.subr.mxu1 %v1179_v0  ;;  %v541_v35 = vld [vmem:[#allocation8 + $0x70] sm:$0xff]  ;;  %v539_v37 = vld [vmem:[#allocation8 + $0x60] sm:$0xff]  ;;  %v538_v38 = vld [vmem:[#allocation8 + $0x58] sm:$0xff] }
  0x72   : > { %818 = vmatpush3.msra.mxu0 %v349_v9  ;;  %853 = vmatpush3.msra.mxu1 %v443_v14  ;;  %v537_v39 = vld [vmem:[#allocation8 + $0x50] sm:$0xff]  ;;  %v536_v40 = vld [vmem:[#allocation8 + $0x48] sm:$0xff]  ;;  %v535_v41 = vld [vmem:[#allocation8 + $0x40] sm:$0xff]  ;;  %p1101_p12 = pnand %p1100_p4, %p1498_p6  ;;  %p1108_p7 = por %p1107_p3, %p1106_p5 }
  0x73   : > { %819 = vmatprep.subr.mxu0 %v1179_v0  ;;  %854 = vmatprep.subr.mxu1 %v1179_v0  ;;  %v534_v42 = vld [vmem:[#allocation8 + $0x38] sm:$0xff]  ;;  %v533_v43 = vld [vmem:[#allocation8 + $0x30] sm:$0xff]  ;;  %v532_v44 = vld [vmem:[#allocation8 + $0x28] sm:$0xff] }
  0x74   : > { %820 = vmatpush3.msra.mxu0 %v348_v11  ;;  %855 = vmatpush3.msra.mxu1 %v442_v16  ;;  %v531_v45 = vld [vmem:[#allocation8 + $0x20] sm:$0xff]  ;;  %v530_v46 = vld [vmem:[#allocation8 + $0x18] sm:$0xff]  ;;  %v749_v47 = vld [vmem:[%s1471_s2] ss:$0 sm:$0xff]  ;;  %p1102_p0 = pneg %p1101_p12 }
  0x75   : > { %821 = vmatprep.subr.mxu0 %v1179_v0  ;;  %856 = vmatprep.subr.mxu1 %v1179_v0  ;;  %v529_v52 = vld [vmem:[#allocation8 + $0x10] sm:$0xff]  ;;  %v528_v53 = vld [vmem:[#allocation8 + $0x8] sm:$0xff]  ;;  %v527_v54 = vld [vmem:[#allocation8] sm:$0xff] }
  0x76   : > { %822 = vmatpush3.msra.mxu0 %v347_v13  ;;  %857 = vmatpush3.msra.mxu1 %v441_v18  ;;  %v750_v55 = vld [vmem:[%s1473_s4] ss:$0 sm:$0xff]  ;;  %p1109_p9 = pnand %p1108_p7, %p1102_p0 }
  0x77   : > { %823 = vmatprep.subr.mxu0 %v1179_v0  ;;  %858 = vmatprep.subr.mxu1 %v1179_v0  ;;  %v751_v60 = vld [vmem:[%s1475_s6] ss:$0 sm:$0xff] }
  0x78   : > { %824 = vmatpush3.msra.mxu0 %v346_v15  ;;  %859 = vmatpush3.msra.mxu1 %v440_v20 }
  0x79   : > { %825 = vmatprep.subr.mxu0 %v1179_v0  ;;  %860 = vmatprep.subr.mxu1 %v1179_v0 }
  0x7a   : > { %826 = vmatpush3.msra.mxu0 %v345_v17  ;;  %861 = vmatpush3.msra.mxu1 %v439_v22 }
  0x7b   : > { %827 = vmatprep.subr.mxu0 %v1179_v0  ;;  %862 = vmatprep.subr.mxu1 %v1179_v0 }
  0x7c   : > { %828 = vmatpush3.msra.mxu0 %v344_v19  ;;  %863 = vmatpush3.msra.mxu1 %v438_v24 }
  0x7d   : > { %829 = vmatprep.subr.mxu0 %v1179_v0  ;;  %864 = vmatprep.subr.mxu1 %v1179_v0 }
  0x7e   : > { %830 = vmatpush3.msra.mxu0 %v343_v21  ;;  %865 = vmatpush3.msra.mxu1 %v437_v26 }
  0x7f   : > { %831 = vmatprep.subr.mxu0 %v1179_v0  ;;  %866 = vmatprep.subr.mxu1 %v1179_v0 }
  0x80   : > { %832 = vmatpush3.msra.mxu0 %v342_v23  ;;  %867 = vmatpush3.msra.mxu1 %v436_v28 }
  0x81   : > { %833 = vmatprep.subr.mxu0 %v1179_v0  ;;  %868 = vmatprep.subr.mxu1 %v1179_v0 }
  0x82   : > { %834 = vmatpush3.msra.mxu0 %v341_v25  ;;  %869 = vmatpush3.msra.mxu1 %v435_v31 }
  0x83   : > { %835 = vmatprep.subr.mxu0 %v1179_v0  ;;  %870 = vmatprep.subr.mxu1 %v1179_v0 }
  0x84   : > { %836 = vmatpush3.msra.mxu0 %v340_v27  ;;  %871 = vmatpush3.msra.mxu1 %v434_v32 }
  0x85   : > { %837 = vmatprep.subr.mxu0 %v1179_v0  ;;  %872 = vmatprep.subr.mxu1 %v1179_v0 }
  0x86   : > { %838 = vmatpush3.msra.mxu0 %v339_v29  ;;  %873 = vmatpush3.msra.mxu1 %v433_v33 }
  0x87   : > { %840 = vmatmul.mubr.f32.vlgmr.msra.gmra.mxu0 %v338_v30  ;;  %877 = vmatprep.subr.mxu0 %v1179_v0 }
  0x88   : > { %909 = vmatprep.mubr.msk.f32.mxu0 %vm1180_vm0, %v1179_v0  ;;  %878 = vmatpush3.msra.mxu0 %v542_v34 }
  0x89   : > { %879 = vmatprep.subr.mxu0 %v1179_v0 }
  0x8a   : > { %880 = vmatpush3.msra.mxu0 %v541_v35 }
  0x8b   : > { %881 = vmatprep.subr.mxu0 %v1179_v0 }
  0x8c   : > { %882 = vmatpush3.msra.mxu0 %v540_v36 }
  0x8d   : > { %883 = vmatprep.subr.mxu0 %v1179_v0 }
  0x8e   : > { %884 = vmatpush3.msra.mxu0 %v539_v37 }
  0x8f   : > { %885 = vmatprep.subr.mxu0 %v1179_v0 }
  0x90   : > { %886 = vmatpush3.msra.mxu0 %v538_v38 }
  0x91   : > { %887 = vmatprep.subr.mxu0 %v1179_v0 }
  0x92   : > { %888 = vmatpush3.msra.mxu0 %v537_v39 }
  0x93   : > { %889 = vmatprep.subr.mxu0 %v1179_v0 }
  0x94   : > { %890 = vmatpush3.msra.mxu0 %v536_v40 }
  0x95   : > { %891 = vmatprep.subr.mxu0 %v1179_v0 }
  0x96   : > { %892 = vmatpush3.msra.mxu0 %v535_v41 }
  0x97   : > { %893 = vmatprep.subr.mxu0 %v1179_v0 }
  0x98   : > { %894 = vmatpush3.msra.mxu0 %v534_v42 }
  0x99   : > { %895 = vmatprep.subr.mxu0 %v1179_v0 }
  0x9a   : > { %896 = vmatpush3.msra.mxu0 %v533_v43 }
  0x9b   : > { %897 = vmatprep.subr.mxu0 %v1179_v0 }
  0x9c   : > { %898 = vmatpush3.msra.mxu0 %v532_v44 }
  0x9d   : > { %899 = vmatprep.subr.mxu0 %v1179_v0 }
  0x9e   : > { %900 = vmatpush3.msra.mxu0 %v531_v45 }
  0x9f   : > { %901 = vmatprep.subr.mxu0 %v1179_v0 }
  0xa0   : > { %902 = vmatpush3.msra.mxu0 %v530_v46 }
  0xa1   : > { %903 = vmatprep.subr.mxu0 %v1179_v0 }
  0xa2   : > { %904 = vmatpush3.msra.mxu0 %v529_v52 }
  0xa3   : > { %905 = vmatprep.subr.mxu0 %v1179_v0 }
  0xa4   : > { %906 = vmatpush3.msra.mxu0 %v528_v53 }
  0xa5   : > { %907 = vmatprep.subr.mxu0 %v1179_v0 }
  0xa6   : > { %908 = vmatpush3.msra.mxu0 %v527_v54 }
 0x147   : > { %v428_v48 = vpop.f32.mrf.mxu0 }
 0x148   : > { %v429_v49 = vadd.f32 %v749_v47, %v428_v48 }
 0x149   : > { %v841_v50 = vpop.f32.mrf.mxu0 }
 0x14a   : > { %v432_v51 = vmax.f32 %v429_v49, 0.0 }
 0x14c   : > { %875 = vmatmul.mubr.f32.vlgmr.msra.gmra.mxu1 %v432_v51 }
 0x20c   : > { %v522_v56 = vpop.f32.mrf.mxu1 }
 0x20d   : > { %v523_v57 = vadd.f32 %v750_v55, %v522_v56 }
 0x20e   : > { %v876_v58 = vpop.f32.mrf.mxu1 }
 0x20f   : > { %v526_v59 = vmax.f32 %v523_v57, 0.0 }
 0x211   : > { %910 = vmatmul.mubr.f32.vlgmr.msra.gmra.mxu0 %v526_v59 }
 0x2d1   : > { %v616_v61 = vpop.f32.mrf.mxu0 }
 0x2d2   : > { %v617_v62 = vadd.f32 %v751_v60, %v616_v61 }
 0x2d3   : > { %v911_v63 = vpop.f32.mrf.mxu0 }
 0x2d4   : > { %v620_v0 = vmax.f32 %v617_v62, 0.0 }
 0x2d6   : > { %621 = vst [vmem:[%s337_s18] sm:$0xff] %v620_v0 }
 0x2d7   : > { %1112 = shalt.err (!%p1109_p9)
}
 0x2d8   : > { %s1113_s9 = scalar_lea.hbm %s634_s21, 128  ;;  %s1117_s10 = scalar_lea.hbm %s1476_s7, 256 }
 0x2d9   : > { %p1114_p13 = scmp.ne.s32.totalorder %s634_s21, %s1113_s9  ;;  %p1118_p11 = scmp.lt.s32.totalorder %s634_s21, %s1476_s7 }
 0x2da   : > { %p1119_p1 = scmp.lt.s32.totalorder %s1117_s10, %s1113_s9 }
 0x2db   : > { %p1115_p8 = pnand %p1114_p13, %p1498_p6 }
 0x2dc   : > { %p1120_p2 = por %p1119_p1, %p1118_p11 }
 0x2dd   : > { %p1116_p10 = pneg %p1115_p8 }
 0x2df   : > { %p1121_p4 = pnand %p1120_p2, %p1116_p10 }
 0x2e1   : > { %1124 = shalt.err (!%p1121_p4)
}
 0x2e2   : > { %926 = dma.vmem_to_hbm [thread:$0]  (%p1498_p6), %s637_s19, 128, %s634_s21, %s623_s1  }
 0x2e3 PF: > { %s648_s22 = sand.u32 1, %s1159_s24   ;;  %p1499_p12 = scmp.ne.s32.totalorder %s1484_s8, 0 }
 0x2e4   : > { %p1500_p0 = scmp.ge.s32.totalorder %s1171_s27, 2  ;;  %s649_s18 = scalar_lea.sflag [#allocation4], %s648_s22 }
 0x2e6   : > { %p943_p5 = pnand %p1500_p0, %p1499_p12 }
 0x2e8   : > { %p944_p3 = pneg %p943_p5 }
 0x2ea   : > { %1154 = dma.done.wait (%p944_p3), %s649_s18, 128  }
 0x2eb   : > { %1156 = vsyncadd (%p944_p3), %s649_s18, 4294967168  ;;  %p22_p7 = scmp.ge.s32.totalorder %s1302_s14, 4   ;;  %s1501_s24 = smov %s1163_s25 }
 0x2ec   : > { %s1502_s25 = smov %s1167_s26  ;;  %s1503_s26 = smov %s1312_s17 }
 0x2ed   : > { %s1504_s27 = smov %s1302_s14  ;;  %24 = sbr.rel (!%p22_p7) target bundleno = 10 (0xa), region = 105 }
 0x2f2   :  { %654 = vsyncpa [#allocation3], 1 }
 0x2f3   :  { %656 = vsyncpa [#allocation3 + $0x1], 1 }
 0x2f4   :  { %657 = vsyncpa [#allocation6], 1 }
 0x2f5   :  { %658 = vsyncpa [#allocation9], 1 }
 0x2f6   :  { %659 = vsyncpa [#allocation4], 1 }
 0x2f7   :  { %661 = vsyncpa [#allocation4 + $0x1], 1 }

// kernel: tpu_custom_call.1
= control target key start
LH: loop header
LB: loop body
LE: loop exit
PB: predicated region body
PF: predicated region fallthrough
CT: control target
= control target key end

     0   :  { %s1469_s0 = inlined_call_operand.hbm [shape: f32[16,128], index: 0, kind: input, shape index: {}]   ;;  %s1470_s1 = inlined_call_operand.hbm [shape: f32[128,128], index: 1, kind: input, shape index: {}]   ;;  %s1471_s2 = inlined_call_operand.vmem [shape: f32[1,128], index: 2, kind: input, shape index: {}]   ;;  %s1472_s3 = inlined_call_operand.hbm [shape: f32[128,128], index: 3, kind: input, shape index: {}]   ;;  %s1473_s4 = inlined_call_operand.vmem [shape: f32[1,128], index: 4, kind: input, shape index: {}]   ;;  %s1474_s5 = inlined_call_operand.hbm [shape: f32[128,128], index: 5, kind: input, shape index: {}]   ;;  %s1475_s6 = inlined_call_operand.vmem [shape: f32[1,128], index: 6, kind: input, shape index: {}]   ;;  %s1476_s7 = inlined_call_operand.hbm [shape: f32[16,128], index: 7, kind: output, shape index: {}]  }
   0x1   :  { %1481 = sst [smem:[#allocation15_spill]] %s1470_s1 }
   0x2   :  { %1482 = sst [smem:[#allocation16_spill]] %s1472_s3 }
   0x3   :  { %12 = vsyncpa [#allocation3], 0 }
   0x4   :  { %14 = vsyncpa [#allocation3 + $0x1], 0 }
   0x5   :  { %15 = vsyncpa [#allocation6], 0 }
   0x6   :  { %16 = vsyncpa [#allocation9], 0 }
   0x7   :  { %17 = vsyncpa [#allocation4], 0 }
   0x8   :  { %19 = vsyncpa [#allocation4 + $0x1], 0  ;;  %s1222_s24 = smov 0   ;;  %s1224_s25 = smov 0  }
   0x9   :  { %s1226_s26 = smov 0   ;;  %s1228_s27 = smov 0  }
   0xa LB: > { %s1243_s28 = sadd.s32 4294967295, %s1171_s27   ;;  %s735_s29 = sadd.s32 4294967294, %s1171_s27   ;;  %s1171_s27 = sphi %s1228_s27, %s1504_s27   ;;  %s1167_s26 = sphi %s1226_s26, %s1503_s26   ;;  %s1163_s25 = sphi %s1224_s25, %s1502_s25   ;;  %s1159_s24 = sphi %s1222_s24, %s1501_s24  }
   0xb   : > { %p45_p0 = scmp.ne.s32.totalorder %s1163_s25, %s1159_s24  ;;  %p1477_p1 = scmp.eq.s32.totalorder %s1243_s28, 0 }
   0xc   : > { %p201_p3 = scmp.eq.s32.totalorder %s735_s29, 1  ;;  %p736_p5 = scmp.ge.s32.totalorder %s1171_s27, 1 }
   0xd   : > { %p1252_p4 = por %p1477_p1, %p45_p0  ;;  %p208_p7 = scmp.lt.s32.totalorder %s1171_s27, 3 }
   0xe   : > { %p1257_p6 = por %p201_p3, %p45_p0  ;;  %s1173_s10 = smov [#allocation5]  }
   0xf   : > { %s1483_s30 = scalar_select %p1252_p4, 1, 0 }
  0x10   : > { %s1484_s8 = scalar_select %p1257_p6, 1, 0 }
  0x11   : > { %p1262_p8 = pnand %p736_p5, %p208_p7  ;;  %s220_s11 = sshll.u32 %s1173_s10, 4  ;;  %s221_s11 = int_to_ptr.vmem [resolvable:$true] %s220_s11 }
  0x12   : > { %s1174_s13 = smov [#allocation7]   ;;  %s1175_s15 = smov [#allocation8]  }
  0x13   : > { %s1485_s9 = scalar_select %p1262_p8, 1, 0 }
  0x14   : > { %p928_p9 = pneg %p1262_p8  ;;  %s236_s14 = sshll.u32 %s1174_s13, 4  ;;  %s237_s14 = int_to_ptr.vmem [resolvable:$true] %s236_s14 }
  0x15   : > { %s252_s16 = sshll.u32 %s1175_s15, 4  ;;  %s1004_s17 = scalar_lea.vmem %s221_s11, 2048  ;;  %s253_s16 = int_to_ptr.vmem [resolvable:$true] %s252_s16 }
  0x16   : > { %p1271_p11 = pnand %p928_p9, %p1477_p1  ;;  %p1005_p13 = scmp.ne.s32.totalorder %s221_s11, %s1004_s17 }
  0x17   : > { %p1012_p5 = scmp.lt.s32.totalorder %s221_s11, %s221_s11  ;;  %p1013_p7 = scmp.lt.s32.totalorder %s1004_s17, %s1004_s17 }
  0x18   : > { %p995_p12 = pneg %p1271_p11 }
  0x19   : > { %p1014_p9 = por %p1013_p7, %p1012_p5 }
  0x1a   : > { %p1007_p0 = pnand %p1005_p13, %p995_p12 }
  0x1c   : > { %p1008_p3 = pneg %p1007_p0 }
  0x1e   : > { %p1015_p10 = pnand %p1014_p9, %p1008_p3 }
  0x20   : > { %1018 = shalt.err (!%p1015_p10)
}
  0x21   : > { %s1176_s18 = smov 128   ;;  %s1177_s19 = smov 8  }
  0x22   : > { %s1487_s1 = sld [smem:[#allocation15_spill]]  ;;  %s1030_s22 = scalar_lea.vmem %s237_s14, 2048 }
  0x23   : > { %p1031_p1 = scmp.ne.s32.totalorder %s237_s14, %s1030_s22  ;;  %p1038_p2 = scmp.lt.s32.totalorder %s237_s14, %s237_s14 }
  0x24   : > { %p1039_p6 = scmp.lt.s32.totalorder %s1030_s22, %s1030_s22 }
  0x25   : > { %p1033_p13 = pnand %p1031_p1, %p995_p12 }
  0x26   : > { %p1040_p5 = por %p1039_p6, %p1038_p2 }
  0x27   : > { %p1034_p0 = pneg %p1033_p13 }
  0x28   : > { %931 = dma.hbm_to_vmem [thread:$0]  (!%p1271_p11), %s1487_s1, 2048, %s221_s11, [#allocation6], %s1176_s18, %s1176_s18, %s1177_s19  }
  0x29   : > { %p1041_p3 = pnand %p1040_p5, %p1034_p0 }
  0x2b   : > { %1044 = shalt.err (!%p1041_p3)
}
  0x2c   : > { %s1488_s3 = sld [smem:[#allocation16_spill]]  ;;  %s1056_s10 = scalar_lea.vmem %s253_s16, 2048 }
  0x2d   : > { %p1057_p10 = scmp.ne.s32.totalorder %s253_s16, %s1056_s10  ;;  %p1064_p9 = scmp.lt.s32.totalorder %s253_s16, %s253_s16 }
  0x2e   : > { %p1065_p13 = scmp.lt.s32.totalorder %s1056_s10, %s1056_s10 }
  0x2f   : > { %p1059_p7 = pnand %p1057_p10, %p995_p12 }
  0x30   : > { %p1066_p4 = por %p1065_p13, %p1064_p9 }
  0x31   : > { %p1060_p1 = pneg %p1059_p7 }
  0x32   : > { %934 = dma.hbm_to_vmem [thread:$0]  (!%p1271_p11), %s1488_s3, 2048, %s237_s14, [#allocation6], %s1176_s18, %s1176_s18, %s1177_s19  }
  0x33   : > { %p1067_p2 = pnand %p1066_p4, %p1060_p1 }
  0x35   : > { %1070 = shalt.err (!%p1067_p2)
}
  0x36   : > { %937 = dma.hbm_to_vmem [thread:$0]  (!%p1271_p11), %s1474_s5, 2048, %s253_s16, [#allocation9], %s1176_s18, %s1176_s18, %s1177_s19  }
  0x37   : > { %s1302_s14 = sadd.s32 1, %s1171_s27   ;;  %s32_s12 = sadd.s32 1, %s1167_s26 }
  0x38   : > { %s29_s15 = ssub.s32 %s1171_s27, %s1302_s14  ;;  %p39_p6 = scmp.ne.s32.totalorder %s1167_s26, %s1163_s25 }
  0x39   : > { %p30_p4 = scmp.eq.s32.totalorder %s29_s15, 0  ;;  %p40_p12 = scmp.eq.s32.totalorder %s1171_s27, 0 }
  0x3a   : > { %p949_p0 = scmp.lt.s32.totalorder %s1171_s27, 2  ;;  %p1489_p3 = scmp.eq.s32.totalorder %s1243_s28, 1 }
  0x3b   : > { %s1312_s17 = scalar_select %p30_p4, %s1167_s26, %s32_s12  }
  0x3c   : > { %p41_p5 = por %p40_p12, %p39_p6  ;;  %p1316_p10 = por %p1489_p3, %p39_p6 }
  0x3d   : > { %s269_s21 = sand.u32 1, %s1167_s26   ;;  %s742_s22 = sshll.u32 %s1171_s27, 7 }
  0x3e   : > { %s1490_s20 = scalar_select %p1316_p10, 1, 0 }
  0x3f   : > { %s741_s16 = sshll.u32 %s269_s21, 3  ;;  %s1325_s23 = scalar_lea.hbm %s1469_s0, %s742_s22 }
  0x40   : > { %s273_s29 = scalar_lea.vmem [#allocation2], %s741_s16  ;;  %p1327_p11 = pnand %p949_p0, %p41_p5 }
  0x41   : > { %s280_s10 = sshll.u32 %s273_s29, 4  ;;  %s270_s13 = scalar_lea.sflag [#allocation3], %s269_s21  ;;  %s281_s10 = int_to_ptr.vmem [resolvable:$true] %s280_s10 }
  0x42   : > { %s1071_s15 = scalar_lea.hbm %s1325_s23, 128  ;;  %p1073_p1 = pneg %p1327_p11 }
  0x43   : > { %p1072_p7 = scmp.ne.s32.totalorder %s1325_s23, %s1071_s15  ;;  %s1076_s18 = scalar_lea.hbm %s1469_s0, 256 }
  0x44   : > { %p1077_p2 = scmp.lt.s32.totalorder %s1325_s23, %s1469_s0  ;;  %p1078_p4 = scmp.lt.s32.totalorder %s1076_s18, %s1071_s15 }
  0x45   : > { %p1074_p9 = pnand %p1073_p1, %p1072_p7 }
  0x46   : > { %p1079_p6 = por %p1078_p4, %p1077_p2 }
  0x47   : > { %p1075_p13 = pneg %p1074_p9 }
  0x49   : > { %p1080_p12 = pnand %p1079_p6, %p1075_p13 }
  0x4b   : > { %1083 = shalt.err (!%p1080_p12)
}
  0x4c   : > { %s1084_s29 = scalar_lea.vmem %s281_s10, 128  ;;  %s1178_s21 = smov [#allocation2]  }
  0x4d   : > { %p1085_p0 = scmp.ne.s32.totalorder %s281_s10, %s1084_s29  ;;  %s1089_s1 = sshll.u32 %s1178_s21, 4  ;;  %s1090_s1 = int_to_ptr.vmem [resolvable:$false] %s1089_s1 }
  0x4e   : > { %s1091_s3 = scalar_lea.vmem %s1090_s1, 256  ;;  %p1092_p7 = scmp.lt.s32.totalorder %s281_s10, %s1090_s1 }
  0x4f   : > { %p1087_p5 = pnand %p1085_p0, %p1073_p1  ;;  %p1093_p9 = scmp.lt.s32.totalorder %s1091_s3, %s1084_s29 }
  0x51   : > { %p1088_p3 = pneg %p1087_p5  ;;  %p1094_p10 = por %p1093_p9, %p1092_p7 }
  0x53   : > { %p1095_p8 = pnand %p1094_p10, %p1088_p3 }
  0x55   : > { %1098 = shalt.err (!%p1095_p8)
}
  0x56   : > { %941 = dma.hbm_to_vmem [thread:$0]  (!%p1327_p11), %s1325_s23, 128, %s281_s10, %s270_s13  }
  0x57   : > { %p1492_p13 = scmp.ne.s32.totalorder %s1485_s9, 0 }
  0x58   : > { %s1348_s15 = sand.u32 (!%p1492_p13), 1, %s1163_s25   ;;  %p1493_p8 = scmp.ne.s32.totalorder (!%p1492_p13), %s1483_s30, 0 }
  0x59   : > { %289 = sbr.rel (%p1492_p13) target bundleno = 739 (0x2e3), region = 48  ;;  %s744_s12 = sshll.u32 (!%p1492_p13), %s1348_s15, 3 }
  0x5a   : > { %s292_s1 = scalar_lea.sflag (!%p1492_p13), [#allocation3], %s1348_s15  ;;  %s1354_s3 = scalar_lea.vmem (!%p1492_p13), [#allocation2], %s744_s12 }
  0x5e   : > { %1142 = dma.done.wait (%p1493_p8), %s292_s1, 128  }
  0x5f   : > { %1144 = vsyncadd (%p1493_p8), %s292_s1, 4294967168  ;;  %p1494_p10 = scmp.eq.s32.totalorder %s1243_s28, 0 }
  0x61   : > { %1146 = dma.done.wait (%p1494_p10), [#allocation6], 4096   ;;  %p1495_p11 = pmov %p1494_p10 }
  0x62   : > { %p1496_p1 = pmov %p1494_p10 }
  0x63   : > { %1148 = vsyncadd (%p1495_p11), [#allocation6], 4294963200 }
  0x64   : > { %1150 = dma.done.wait (%p1496_p1), [#allocation9], 2048   ;;  %p1497_p2 = pmov %p1496_p1 }
  0x65   : > { %v1179_v0 = vmov 0.0   ;;  %vm1180_vm0 = vmmov 0   ;;  %v354_v1 = vld [vmem:[#allocation5 + $0x78] sm:$0xff]  ;;  %v353_v2 = vld [vmem:[#allocation5 + $0x70] sm:$0xff]  ;;  %v352_v3 = vld [vmem:[#allocation5 + $0x68] sm:$0xff]  ;;  %s753_s22 = sshll.u32 %s1243_s28, 7 }
  0x66   : > { %1152 = vsyncadd (%p1497_p2), [#allocation9], 4294965248  ;;  %807 = vmatprep.subr.mxu0 %v1179_v0  ;;  %839 = vmatprep.mubr.msk.f32.mxu0 %vm1180_vm0, %v1179_v0  ;;  %v351_v4 = vld [vmem:[#allocation5 + $0x60] sm:$0xff]  ;;  %v448_v5 = vld [vmem:[#allocation7 + $0x78] sm:$0xff]  ;;  %s337_s18 = scalar_lea.vmem [#allocation10], %s744_s12  ;;  %s634_s21 = scalar_lea.hbm %s1476_s7, %s753_s22 }
  0x67   : > { %842 = vmatprep.subr.mxu1 %v1179_v0  ;;  %874 = vmatprep.mubr.msk.f32.mxu1 %vm1180_vm0, %v1179_v0  ;;  %v350_v6 = vld [vmem:[#allocation5 + $0x58] sm:$0xff]  ;;  %v447_v7 = vld [vmem:[#allocation7 + $0x70] sm:$0xff]  ;;  %v446_v8 = vld [vmem:[#allocation7 + $0x68] sm:$0xff]  ;;  %s636_s19 = sshll.u32 %s337_s18, 4  ;;  %s623_s1 = scalar_lea.sflag [#allocation4], %s1348_s15  ;;  %s637_s19 = int_to_ptr.vmem [resolvable:$true] %s636_s19 }
  0x68   : > { %808 = vmatpush3.msra.mxu0 %v354_v1  ;;  %843 = vmatpush3.msra.mxu1 %v448_v5  ;;  %v349_v9 = vld [vmem:[#allocation5 + $0x50] sm:$0xff]  ;;  %v445_v10 = vld [vmem:[#allocation7 + $0x60] sm:$0xff]  ;;  %v348_v11 = vld [vmem:[#allocation5 + $0x48] sm:$0xff]  ;;  %p1498_p6 = scmp.ne.s32.totalorder %s1490_s20, 0  ;;  %s1181_s30 = smov [#allocation10]  }
  0x69   : > { %809 = vmatprep.subr.mxu0 %v1179_v0  ;;  %844 = vmatprep.subr.mxu1 %v1179_v0  ;;  %v444_v12 = vld [vmem:[#allocation7 + $0x58] sm:$0xff]  ;;  %v347_v13 = vld [vmem:[#allocation5 + $0x40] sm:$0xff]  ;;  %v443_v14 = vld [vmem:[#allocation7 + $0x50] sm:$0xff]  ;;  %s1103_s28 = sshll.u32 %s1181_s30, 4  ;;  %s1104_s28 = int_to_ptr.vmem [resolvable:$false] %s1103_s28 }
  0x6a   : > { %810 = vmatpush3.msra.mxu0 %v353_v2  ;;  %845 = vmatpush3.msra.mxu1 %v447_v7  ;;  %v346_v15 = vld [vmem:[#allocation5 + $0x38] sm:$0xff]  ;;  %v442_v16 = vld [vmem:[#allocation7 + $0x48] sm:$0xff]  ;;  %v345_v17 = vld [vmem:[#allocation5 + $0x30] sm:$0xff]  ;;  %s1105_s12 = scalar_lea.vmem %s1104_s28, 256  ;;  %p1106_p5 = scmp.lt.s32.totalorder %s637_s19, %s1104_s28 }
  0x6b   : > { %811 = vmatprep.subr.mxu0 %v1179_v0  ;;  %846 = vmatprep.subr.mxu1 %v1179_v0  ;;  %v441_v18 = vld [vmem:[#allocation7 + $0x40] sm:$0xff]  ;;  %v344_v19 = vld [vmem:[#allocation5 + $0x28] sm:$0xff]  ;;  %v440_v20 = vld [vmem:[#allocation7 + $0x38] sm:$0xff] }
  0x6c   : > { %812 = vmatpush3.msra.mxu0 %v352_v3  ;;  %847 = vmatpush3.msra.mxu1 %v446_v8  ;;  %v343_v21 = vld [vmem:[#allocation5 + $0x20] sm:$0xff]  ;;  %v439_v22 = vld [vmem:[#allocation7 + $0x30] sm:$0xff]  ;;  %v342_v23 = vld [vmem:[#allocation5 + $0x18] sm:$0xff] }
  0x6d   : > { %813 = vmatprep.subr.mxu0 %v1179_v0  ;;  %848 = vmatprep.subr.mxu1 %v1179_v0  ;;  %v438_v24 = vld [vmem:[#allocation7 + $0x28] sm:$0xff]  ;;  %v341_v25 = vld [vmem:[#allocation5 + $0x10] sm:$0xff]  ;;  %v437_v26 = vld [vmem:[#allocation7 + $0x20] sm:$0xff] }
  0x6e   : > { %814 = vmatpush3.msra.mxu0 %v351_v4  ;;  %849 = vmatpush3.msra.mxu1 %v445_v10  ;;  %v340_v27 = vld [vmem:[#allocation5 + $0x8] sm:$0xff]  ;;  %v436_v28 = vld [vmem:[#allocation7 + $0x18] sm:$0xff]  ;;  %v339_v29 = vld [vmem:[#allocation5] sm:$0xff] }
  0x6f   : > { %815 = vmatprep.subr.mxu0 %v1179_v0  ;;  %850 = vmatprep.subr.mxu1 %v1179_v0  ;;  %v338_v30 = vld [vmem:[%s1354_s3] sm:$0xff]  ;;  %v434_v32 = vld [vmem:[#allocation7 + $0x8] sm:$0xff]  ;;  %v433_v33 = vld [vmem:[#allocation7] sm:$0xff]  ;;  %s1099_s3 = scalar_lea.vmem %s637_s19, 128 }
  0x70   : > { %816 = vmatpush3.msra.mxu0 %v350_v6  ;;  %851 = vmatpush3.msra.mxu1 %v444_v12  ;;  %v435_v31 = vld [vmem:[#allocation7 + $0x10] sm:$0xff]  ;;  %v542_v34 = vld [vmem:[#allocation8 + $0x78] sm:$0xff]  ;;  %v540_v36 = vld [vmem:[#allocation8 + $0x68] sm:$0xff]  ;;  %p1100_p4 = scmp.ne.s32.totalorder %s637_s19, %s1099_s3  ;;  %p1107_p3 = scmp.lt.s32.totalorder %s1105_s12, %s1099_s3 }
  0x71   : > { %817 = vmatprep.subr.mxu0 %v1179_v0  ;;  %852 = vmatprep.subr.mxu1 %v1179_v0  ;;  %v541_v35 = vld [vmem:[#allocation8 + $0x70] sm:$0xff]  ;;  %v539_v37 = vld [vmem:[#allocation8 + $0x60] sm:$0xff]  ;;  %v538_v38 = vld [vmem:[#allocation8 + $0x58] sm:$0xff] }
  0x72   : > { %818 = vmatpush3.msra.mxu0 %v349_v9  ;;  %853 = vmatpush3.msra.mxu1 %v443_v14  ;;  %v537_v39 = vld [vmem:[#allocation8 + $0x50] sm:$0xff]  ;;  %v536_v40 = vld [vmem:[#allocation8 + $0x48] sm:$0xff]  ;;  %v535_v41 = vld [vmem:[#allocation8 + $0x40] sm:$0xff]  ;;  %p1101_p12 = pnand %p1100_p4, %p1498_p6  ;;  %p1108_p7 = por %p1107_p3, %p1106_p5 }
  0x73   : > { %819 = vmatprep.subr.mxu0 %v1179_v0  ;;  %854 = vmatprep.subr.mxu1 %v1179_v0  ;;  %v534_v42 = vld [vmem:[#allocation8 + $0x38] sm:$0xff]  ;;  %v533_v43 = vld [vmem:[#allocation8 + $0x30] sm:$0xff]  ;;  %v532_v44 = vld [vmem:[#allocation8 + $0x28] sm:$0xff] }
  0x74   : > { %820 = vmatpush3.msra.mxu0 %v348_v11  ;;  %855 = vmatpush3.msra.mxu1 %v442_v16  ;;  %v531_v45 = vld [vmem:[#allocation8 + $0x20] sm:$0xff]  ;;  %v530_v46 = vld [vmem:[#allocation8 + $0x18] sm:$0xff]  ;;  %v749_v47 = vld [vmem:[%s1471_s2] ss:$0 sm:$0xff]  ;;  %p1102_p0 = pneg %p1101_p12 }
  0x75   : > { %821 = vmatprep.subr.mxu0 %v1179_v0  ;;  %856 = vmatprep.subr.mxu1 %v1179_v0  ;;  %v529_v52 = vld [vmem:[#allocation8 + $0x10] sm:$0xff]  ;;  %v528_v53 = vld [vmem:[#allocation8 + $0x8] sm:$0xff]  ;;  %v527_v54 = vld [vmem:[#allocation8] sm:$0xff] }
  0x76   : > { %822 = vmatpush3.msra.mxu0 %v347_v13  ;;  %857 = vmatpush3.msra.mxu1 %v441_v18  ;;  %v750_v55 = vld [vmem:[%s1473_s4] ss:$0 sm:$0xff]  ;;  %p1109_p9 = pnand %p1108_p7, %p1102_p0 }
  0x77   : > { %823 = vmatprep.subr.mxu0 %v1179_v0  ;;  %858 = vmatprep.subr.mxu1 %v1179_v0  ;;  %v751_v60 = vld [vmem:[%s1475_s6] ss:$0 sm:$0xff] }
  0x78   : > { %824 = vmatpush3.msra.mxu0 %v346_v15  ;;  %859 = vmatpush3.msra.mxu1 %v440_v20 }
  0x79   : > { %825 = vmatprep.subr.mxu0 %v1179_v0  ;;  %860 = vmatprep.subr.mxu1 %v1179_v0 }
  0x7a   : > { %826 = vmatpush3.msra.mxu0 %v345_v17  ;;  %861 = vmatpush3.msra.mxu1 %v439_v22 }
  0x7b   : > { %827 = vmatprep.subr.mxu0 %v1179_v0  ;;  %862 = vmatprep.subr.mxu1 %v1179_v0 }
  0x7c   : > { %828 = vmatpush3.msra.mxu0 %v344_v19  ;;  %863 = vmatpush3.msra.mxu1 %v438_v24 }
  0x7d   : > { %829 = vmatprep.subr.mxu0 %v1179_v0  ;;  %864 = vmatprep.subr.mxu1 %v1179_v0 }
  0x7e   : > { %830 = vmatpush3.msra.mxu0 %v343_v21  ;;  %865 = vmatpush3.msra.mxu1 %v437_v26 }
  0x7f   : > { %831 = vmatprep.subr.mxu0 %v1179_v0  ;;  %866 = vmatprep.subr.mxu1 %v1179_v0 }
  0x80   : > { %832 = vmatpush3.msra.mxu0 %v342_v23  ;;  %867 = vmatpush3.msra.mxu1 %v436_v28 }
  0x81   : > { %833 = vmatprep.subr.mxu0 %v1179_v0  ;;  %868 = vmatprep.subr.mxu1 %v1179_v0 }
  0x82   : > { %834 = vmatpush3.msra.mxu0 %v341_v25  ;;  %869 = vmatpush3.msra.mxu1 %v435_v31 }
  0x83   : > { %835 = vmatprep.subr.mxu0 %v1179_v0  ;;  %870 = vmatprep.subr.mxu1 %v1179_v0 }
  0x84   : > { %836 = vmatpush3.msra.mxu0 %v340_v27  ;;  %871 = vmatpush3.msra.mxu1 %v434_v32 }
  0x85   : > { %837 = vmatprep.subr.mxu0 %v1179_v0  ;;  %872 = vmatprep.subr.mxu1 %v1179_v0 }
  0x86   : > { %838 = vmatpush3.msra.mxu0 %v339_v29  ;;  %873 = vmatpush3.msra.mxu1 %v433_v33 }
  0x87   : > { %840 = vmatmul.mubr.f32.vlgmr.msra.gmra.mxu0 %v338_v30  ;;  %877 = vmatprep.subr.mxu0 %v1179_v0 }
  0x88   : > { %909 = vmatprep.mubr.msk.f32.mxu0 %vm1180_vm0, %v1179_v0  ;;  %878 = vmatpush3.msra.mxu0 %v542_v34 }
  0x89   : > { %879 = vmatprep.subr.mxu0 %v1179_v0 }
  0x8a   : > { %880 = vmatpush3.msra.mxu0 %v541_v35 }
  0x8b   : > { %881 = vmatprep.subr.mxu0 %v1179_v0 }
  0x8c   : > { %882 = vmatpush3.msra.mxu0 %v540_v36 }
  0x8d   : > { %883 = vmatprep.subr.mxu0 %v1179_v0 }
  0x8e   : > { %884 = vmatpush3.msra.mxu0 %v539_v37 }
  0x8f   : > { %885 = vmatprep.subr.mxu0 %v1179_v0 }
  0x90   : > { %886 = vmatpush3.msra.mxu0 %v538_v38 }
  0x91   : > { %887 = vmatprep.subr.mxu0 %v1179_v0 }
  0x92   : > { %888 = vmatpush3.msra.mxu0 %v537_v39 }
  0x93   : > { %889 = vmatprep.subr.mxu0 %v1179_v0 }
  0x94   : > { %890 = vmatpush3.msra.mxu0 %v536_v40 }
  0x95   : > { %891 = vmatprep.subr.mxu0 %v1179_v0 }
  0x96   : > { %892 = vmatpush3.msra.mxu0 %v535_v41 }
  0x97   : > { %893 = vmatprep.subr.mxu0 %v1179_v0 }
  0x98   : > { %894 = vmatpush3.msra.mxu0 %v534_v42 }
  0x99   : > { %895 = vmatprep.subr.mxu0 %v1179_v0 }
  0x9a   : > { %896 = vmatpush3.msra.mxu0 %v533_v43 }
  0x9b   : > { %897 = vmatprep.subr.mxu0 %v1179_v0 }
  0x9c   : > { %898 = vmatpush3.msra.mxu0 %v532_v44 }
  0x9d   : > { %899 = vmatprep.subr.mxu0 %v1179_v0 }
  0x9e   : > { %900 = vmatpush3.msra.mxu0 %v531_v45 }
  0x9f   : > { %901 = vmatprep.subr.mxu0 %v1179_v0 }
  0xa0   : > { %902 = vmatpush3.msra.mxu0 %v530_v46 }
  0xa1   : > { %903 = vmatprep.subr.mxu0 %v1179_v0 }
  0xa2   : > { %904 = vmatpush3.msra.mxu0 %v529_v52 }
  0xa3   : > { %905 = vmatprep.subr.mxu0 %v1179_v0 }
  0xa4   : > { %906 = vmatpush3.msra.mxu0 %v528_v53 }
  0xa5   : > { %907 = vmatprep.subr.mxu0 %v1179_v0 }
  0xa6   : > { %908 = vmatpush3.msra.mxu0 %v527_v54 }
 0x147   : > { %v428_v48 = vpop.f32.mrf.mxu0 }
 0x148   : > { %v429_v49 = vadd.f32 %v749_v47, %v428_v48 }
 0x149   : > { %v841_v50 = vpop.f32.mrf.mxu0 }
 0x14a   : > { %v432_v51 = vmax.f32 %v429_v49, 0.0 }
 0x14c   : > { %875 = vmatmul.mubr.f32.vlgmr.msra.gmra.mxu1 %v432_v51 }
 0x20c   : > { %v522_v56 = vpop.f32.mrf.mxu1 }
 0x20d   : > { %v523_v57 = vadd.f32 %v750_v55, %v522_v56 }
 0x20e   : > { %v876_v58 = vpop.f32.mrf.mxu1 }
 0x20f   : > { %v526_v59 = vmax.f32 %v523_v57, 0.0 }
 0x211   : > { %910 = vmatmul.mubr.f32.vlgmr.msra.gmra.mxu0 %v526_v59 }
 0x2d1   : > { %v616_v61 = vpop.f32.mrf.mxu0 }
 0x2d2   : > { %v617_v62 = vadd.f32 %v751_v60, %v616_v61 }
 0x2d3   : > { %v911_v63 = vpop.f32.mrf.mxu0 }
 0x2d4   : > { %v620_v0 = vmax.f32 %v617_v62, 0.0 }
 0x2d6   : > { %621 = vst [vmem:[%s337_s18] sm:$0xff] %v620_v0 }
 0x2d7   : > { %1112 = shalt.err (!%p1109_p9)
}
 0x2d8   : > { %s1113_s9 = scalar_lea.hbm %s634_s21, 128  ;;  %s1117_s10 = scalar_lea.hbm %s1476_s7, 256 }
 0x2d9   : > { %p1114_p13 = scmp.ne.s32.totalorder %s634_s21, %s1113_s9  ;;  %p1118_p11 = scmp.lt.s32.totalorder %s634_s21, %s1476_s7 }
 0x2da   : > { %p1119_p1 = scmp.lt.s32.totalorder %s1117_s10, %s1113_s9 }
 0x2db   : > { %p1115_p8 = pnand %p1114_p13, %p1498_p6 }
 0x2dc   : > { %p1120_p2 = por %p1119_p1, %p1118_p11 }
 0x2dd   : > { %p1116_p10 = pneg %p1115_p8 }
 0x2df   : > { %p1121_p4 = pnand %p1120_p2, %p1116_p10 }
 0x2e1   : > { %1124 = shalt.err (!%p1121_p4)
}
 0x2e2   : > { %926 = dma.vmem_to_hbm [thread:$0]  (%p1498_p6), %s637_s19, 128, %s634_s21, %s623_s1  }
 0x2e3 PF: > { %s648_s22 = sand.u32 1, %s1159_s24   ;;  %p1499_p12 = scmp.ne.s32.totalorder %s1484_s8, 0 }
 0x2e4   : > { %p1500_p0 = scmp.ge.s32.totalorder %s1171_s27, 2  ;;  %s649_s18 = scalar_lea.sflag [#allocation4], %s648_s22 }
 0x2e6   : > { %p943_p5 = pnand %p1500_p0, %p1499_p12 }
 0x2e8   : > { %p944_p3 = pneg %p943_p5 }
 0x2ea   : > { %1154 = dma.done.wait (%p944_p3), %s649_s18, 128  }
 0x2eb   : > { %1156 = vsyncadd (%p944_p3), %s649_s18, 4294967168  ;;  %p22_p7 = scmp.ge.s32.totalorder %s1302_s14, 4   ;;  %s1501_s24 = smov %s1163_s25 }
 0x2ec   : > { %s1502_s25 = smov %s1167_s26  ;;  %s1503_s26 = smov %s1312_s17 }
 0x2ed   : > { %s1504_s27 = smov %s1302_s14  ;;  %24 = sbr.rel (!%p22_p7) target bundleno = 10 (0xa), region = 105 }
 0x2f2   :  { %654 = vsyncpa [#allocation3], 1 }
 0x2f3   :  { %656 = vsyncpa [#allocation3 + $0x1], 1 }
 0x2f4   :  { %657 = vsyncpa [#allocation6], 1 }
 0x2f5   :  { %658 = vsyncpa [#allocation9], 1 }
 0x2f6   :  { %659 = vsyncpa [#allocation4], 1 }
 0x2f7   :  { %661 = vsyncpa [#allocation4 + $0x1], 1 }

</bundles_post_ra>
